<compile_context>
chip_gen: v7x
topology: tpu7x:2x2x1
jax: 0.10.0
libtpu: 0.0.40
codegen_flags: <defaults>
</compile_context>

<pallas_src>
import functools

import jax
import jax.numpy as jnp
from jax.experimental import pallas as pl
from jax.experimental.pallas import tpu as pltpu


# ---------------------------------------------------------------------------
# Fused path: im2col + projection in a single pass over the raw image.
# ---------------------------------------------------------------------------
def _fused_kernel(x_ref, w_ref, b_ref, y_ref, *, C, P, R, GW):
    # x_ref: (1, C, R*P, GW*P) f32 image slab (R patch-rows of one image)
    # w_ref: (K, E)  bf16 projection matrix, K = C*P*P   (VMEM resident)
    # b_ref: (1, E)  f32 bias                            (VMEM resident)
    # y_ref: (1, R*GW, E) out_dtype
    x = x_ref[0]                                     # (C, R*P, GW*P)
    x = x.reshape(C, R, P, GW, P)                    # split patch rows / cols
    x = x.transpose(1, 3, 0, 2, 4)                   # (R, GW, C, P, P)
    patches = x.reshape(R * GW, C * P * P).astype(jnp.bfloat16)
    acc = jnp.dot(patches, w_ref[...], preferred_element_type=jnp.float32)
    y_ref[0] = (acc + b_ref[...]).astype(y_ref.dtype)


def _pick_rows_per_step(B, GH, GW, P, target_rows=512):
    """Patch-rows per grid step: a divisor R of GH with R*GW <= target_rows,
    (R*P) sublane-aligned, and (when possible) >= 2 grid steps so both v7x
    TensorCores get work."""
    best = 1
    for R in range(1, GH + 1):
        if GH % R:
            continue
        if (R * P) % 8 != 0 and R != GH:            # keep the DMA sublane-aligned
            continue
        if R * GW > target_rows:
            continue
        if (B * GH) // R < 2 and R > 1 and B * GH >= 2:
            continue                                 # keep >= 2 grid steps
        best = R
    return best


def _patch_embed_fused(x, w_mat, b_mat, *, patch_size, out_dtype, target_rows=512):
    B, C, H, W = x.shape
    P = patch_size
    GH, GW = H // P, W // P
    K, E = w_mat.shape

    R = _pick_rows_per_step(B, GH, GW, P, target_rows)
    n_r = GH // R                                    # row tiles per image
    grid = (B * n_r,)

    kernel = functools.partial(_fused_kernel, C=C, P=P, R=R, GW=GW)
    out = pl.pallas_call(
        kernel,
        out_shape=jax.ShapeDtypeStruct((B * n_r, R * GW, E), out_dtype),
        grid=grid,
        in_specs=[
            pl.BlockSpec((1, C, R * P, W), lambda i: (i // n_r, 0, i % n_r, 0)),
            pl.BlockSpec((K, E), lambda i: (0, 0)),   # weights: VMEM-resident
            pl.BlockSpec((1, E), lambda i: (0, 0)),   # bias:    VMEM-resident
        ],
        out_specs=pl.BlockSpec((1, R * GW, E), lambda i: (i, 0, 0)),
        compiler_params=pltpu.CompilerParams(
            dimension_semantics=("parallel",)),       # shard tiles across TCs (v7x)
        cost_estimate=pl.CostEstimate(
            flops=2 * B * GH * GW * K * E,
            transcendentals=0,
            bytes_accessed=(B * C * H * W * x.dtype.itemsize
                            + K * E * w_mat.dtype.itemsize
                            + B * GH * GW * E * jnp.dtype(out_dtype).itemsize)),
    )(x, w_mat, b_mat)
    return out.reshape(B, GH * GW, E)


# ---------------------------------------------------------------------------
# Fallback path: wrapper-side im2col (one extra HBM pass) + matmul kernel.
# ---------------------------------------------------------------------------
def _matmul_kernel(p_ref, w_ref, b_ref, y_ref):
    acc = jnp.dot(p_ref[...], w_ref[...], preferred_element_type=jnp.float32)
    y_ref[...] = (acc + b_ref[...]).astype(y_ref.dtype)


def _pick_row_tile(M, target=512):
    """Largest multiple-of-8 divisor of M that is <= target (prefer >= 2 tiles).
    Returns (tile, padded_M)."""
    cands = [d for d in range(8, min(M, target) + 1, 8) if M % d == 0]
    if cands:
        pref = [d for d in cands if M // d >= 2]
        return (pref[-1] if pref else cands[-1]), M
    if M <= target:
        return M, M                                  # single full-extent tile
    return target, ((M + target - 1) // target) * target   # last resort: pad


def _patch_embed_unfused(x, w_mat, b_mat, *, patch_size, out_dtype, target_rows=512):
    B, C, H, W = x.shape
    P = patch_size
    GH, GW = H // P, W // P
    K, E = w_mat.shape
    N = GH * GW
    M = B * N

    # One XLA transpose+cast pass over the activations (only used as fallback).
    patches = (x.reshape(B, C, GH, P, GW, P)
                 .transpose(0, 2, 4, 1, 3, 5)
                 .reshape(M, K)
                 .astype(jnp.bfloat16))

    tm, m_pad = _pick_row_tile(M, target_rows)
    if m_pad != M:
        patches = jnp.pad(patches, ((0, m_pad - M), (0, 0)))

    out = pl.pallas_call(
        _matmul_kernel,
        out_shape=jax.ShapeDtypeStruct((m_pad, E), out_dtype),
        grid=(m_pad // tm,),
        in_specs=[
            pl.BlockSpec((tm, K), lambda i: (i, 0)),  # patch rows: tiled
            pl.BlockSpec((K, E), lambda i: (0, 0)),   # weights: VMEM-resident
            pl.BlockSpec((1, E), lambda i: (0, 0)),   # bias:    VMEM-resident
        ],
        out_specs=pl.BlockSpec((tm, E), lambda i: (i, 0)),
        compiler_params=pltpu.CompilerParams(
            dimension_semantics=("parallel",)),
        cost_estimate=pl.CostEstimate(
            flops=2 * M * K * E,
            transcendentals=0,
            bytes_accessed=(M * K * 2 + K * E * 2
                            + M * E * jnp.dtype(out_dtype).itemsize)),
    )(patches, w_mat, b_mat)
    return out[:M].reshape(B, N, E)


# ---------------------------------------------------------------------------
# Public entry point.
# ---------------------------------------------------------------------------
def patch_embed_forward(x, weight, bias, *, patch_size, out_dtype=jnp.bfloat16,
                        fuse=True, target_rows=512):
    """PatchEmbed forward.

    x:      (B, C, H, W)  float32
    weight: (E, C, P, P)  float32   (torch Conv2d layout)
    bias:   (E,)          float32
    returns (B, N, E)     out_dtype, N = (H//P)*(W//P)

    The matmul runs in bf16 on the MXU with f32 accumulation; output is emitted
    in `out_dtype` (bf16 default, per the consumer; pass jnp.float32 for exact
    parity with the f32 torch module at 2x output HBM traffic).
    """
    B, C, H, W = x.shape
    P = patch_size
    assert H % P == 0 and W % P == 0, (
        f"Input image size ({H}*{W}) must be divisible by patch size {P}.")
    E = weight.shape[0]
    K = C * P * P

    # Projection weights / bias are tiny: reshape + cast once, wrapper-side.
    w_mat = weight.reshape(E, K).T.astype(jnp.bfloat16)          # (K, E)
    b_mat = bias.reshape(1, E).astype(jnp.float32)               # (1, E)

    if fuse:
        try:
            return _patch_embed_fused(x, w_mat, b_mat, patch_size=P,
                                      out_dtype=out_dtype, target_rows=target_rows)
        except Exception:
            # TODO(synk): Mosaic could not lower the in-kernel im2col rearrange on
            # this backend/jax version; fall back to wrapper-side im2col (costs one
            # extra HBM pass over the activations). Cache this decision in prod.
            pass
    return _patch_embed_unfused(x, w_mat, b_mat, patch_size=P,
                                out_dtype=out_dtype, target_rows=target_rows)


if __name__ == "__main__":
    key = jax.random.PRNGKey(0)
    kx, kw, kb = jax.random.split(key, 3)

    # Small PatchEmbed: 32x32 image, 8x8 patches, 3 channels, embed_dim=128.
    B, C, IMG, P, E = 2, 3, 32, 8, 128
    x = jax.random.normal(kx, (B, C, IMG, IMG), dtype=jnp.float32)
    weight = 0.02 * jax.random.normal(kw, (E, C, P, P), dtype=jnp.float32)
    bias = 0.02 * jax.random.normal(kb, (E,), dtype=jnp.float32)

    GH = GW = IMG // P
    N = GH * GW

    # Pure-JAX f32 reference of the same math
    # (Conv2d stride=P kernel=P  ==  unfold + matmul, then flatten/transpose).
    xp = (x.reshape(B, C, GH, P, GW, P)
            .transpose(0, 2, 4, 1, 3, 5)
            .reshape(B, N, C * P * P))
    y_ref = xp @ weight.reshape(E, -1).T + bias                  # (B, N, E) f32

    def check(y, name):
        assert y.shape == (B, N, E), f"{name}: bad output shape {y.shape}"
        err = float(jnp.max(jnp.abs(y.astype(jnp.float32) - y_ref)))
        assert err < 2e-2, f"{name}: mismatch vs reference, max abs err={err}"

    # Preferred (fused im2col) path -- falls back automatically if unsupported.
    y = jax.block_until_ready(patch_embed_forward(x, weight, bias, patch_size=P))
    check(y, "fused")

    # Explicitly exercise the wrapper-side im2col fallback kernel as well.
    y_fb = jax.block_until_ready(
        patch_embed_forward(x, weight, bias, patch_size=P, fuse=False))
    check(y_fb, "fallback")

    print("KERNEL_OK")
</pallas_src>

<mosaic_0001>
module attributes {stable_mosaic.version = 11 : i64} {
  func.func @_matmul_kernel(%arg0: i32, %arg1: memref<16x192xbf16, #tpu.memory_space<vmem>>, %arg2: memref<192x128xbf16, #tpu.memory_space<vmem>>, %arg3: memref<1x128xf32, #tpu.memory_space<vmem>>, %arg4: memref<16x128xbf16, #tpu.memory_space<vmem>>) attributes {dimension_semantics = [#tpu.dimension_semantics<parallel>], iteration_bounds = array<i64: 2>, scalar_prefetch = 0 : i64, scratch_operands = 0 : i64, tpu.core_type = #tpu.core_type<tc>, window_params = [{transform_indices = @transform_0, window_bounds = array<i64: 16, 192>}, {pipeline_mode = #tpu.pipeline_mode<synchronous>, transform_indices = @transform_1, window_bounds = array<i64: 192, 128>}, {pipeline_mode = #tpu.pipeline_mode<synchronous>, transform_indices = @transform_2, window_bounds = array<i64: 1, 128>}, {transform_indices = @transform_3, window_bounds = array<i64: 16, 128>}]} {
    %c0 = arith.constant 0 : index
    %c0_0 = arith.constant 0 : index
    %0 = vector.load %arg1[%c0, %c0_0] : memref<16x192xbf16, #tpu.memory_space<vmem>>, vector<16x192xbf16>
    %c0_1 = arith.constant 0 : index
    %c0_2 = arith.constant 0 : index
    %1 = vector.load %arg2[%c0_1, %c0_2] : memref<192x128xbf16, #tpu.memory_space<vmem>>, vector<192x128xbf16>
    %cst = arith.constant dense<0.000000e+00> : vector<16x128xf32>
    %2 = tpu.matmul %0, %1, %cst {dimension_numbers = #tpu.dot_dimension_numbers<[1], [0], [0], [1], [0, 0, 1, 1], [], []>} : vector<16x192xbf16>, vector<192x128xbf16>, vector<16x128xf32> -> vector<16x128xf32>
    %c0_3 = arith.constant 0 : index
    %c0_4 = arith.constant 0 : index
    %3 = vector.load %arg3[%c0_3, %c0_4] : memref<1x128xf32, #tpu.memory_space<vmem>>, vector<1x128xf32>
    %4 = vector.broadcast %3 : vector<1x128xf32> to vector<16x128xf32>
    %5 = arith.addf %2, %4 : vector<16x128xf32>
    %6 = arith.truncf %5 : vector<16x128xf32> to vector<16x128xbf16>
    %c0_5 = arith.constant 0 : index
    %c0_6 = arith.constant 0 : index
    %7 = vector.load %arg4[%c0_5, %c0_6] : memref<16x128xbf16, #tpu.memory_space<vmem>>, vector<16x128xbf16>
    tpu.vector_store %arg4[%c0_5, %c0_6], %6 {strides = array<i32>} : memref<16x128xbf16, #tpu.memory_space<vmem>>, vector<16x128xbf16>,
    return
  }
  func.func @transform_0(%arg0: i32) -> (i32, i32) {
    %c0_i32 = arith.constant 0 : i32
    %c0_i32_0 = arith.constant 0 : i32
    return %arg0, %c0_i32 : i32, i32
  }
  func.func @transform_1(%arg0: i32) -> (i32, i32) {
    %c0_i32 = arith.constant 0 : i32
    %c0_i32_0 = arith.constant 0 : i32
    %c0_i32_1 = arith.constant 0 : i32
    return %c0_i32, %c0_i32_0 : i32, i32
  }
  func.func @transform_2(%arg0: i32) -> (i32, i32) {
    %c0_i32 = arith.constant 0 : i32
    %c0_i32_0 = arith.constant 0 : i32
    %c0_i32_1 = arith.constant 0 : i32
    return %c0_i32, %c0_i32_0 : i32, i32
  }
  func.func @transform_3(%arg0: i32) -> (i32, i32) {
    %c0_i32 = arith.constant 0 : i32
    %c0_i32_0 = arith.constant 0 : i32
    return %arg0, %c0_i32 : i32, i32
  }
}

</mosaic_0001>

<bundles_post_ra>
// kernel: tpu_custom_call.1
= control target key start
LH: loop header
LB: loop body
LE: loop exit
PB: predicated region body
PF: predicated region fallthrough
CT: control target
= control target key end

     0   :  { %8 = vsyncpa [#allocation3], 0  ;;  %s967_s0 = inlined_call_operand.hbm [shape: bf16[32,192], index: 0, kind: input, shape index: {}]   ;;  %s968_s1 = inlined_call_operand.hbm [shape: bf16[192,128], index: 1, kind: input, shape index: {}]   ;;  %s969_s2 = inlined_call_operand.vmem [shape: f32[1,128], index: 2, kind: input, shape index: {}]   ;;  %s970_s3 = inlined_call_operand.hbm [shape: bf16[32,128], index: 3, kind: output, shape index: {}]  }
   0x1   :  { %10 = vsyncpa [#allocation3 + $0x1], 0 }
   0x2   :  { %11 = vsyncpa [#allocation6], 0 }
   0x3   :  { %12 = vsyncpa [#allocation4], 0 }
   0x4   :  { %14 = vsyncpa [#allocation4 + $0x1], 0  ;;  %s758_s12 = smov 0   ;;  %s760_s13 = smov 0  }
   0x5   :  { %s762_s14 = smov 0   ;;  %s764_s15 = smov 0  }
   0x6 LB: > { %s779_s16 = sadd.s32 4294967295, %s726_s15   ;;  %s474_s17 = sadd.s32 4294967294, %s726_s15   ;;  %s726_s15 = sphi %s764_s15, %s990_s15   ;;  %s722_s14 = sphi %s762_s14, %s989_s14   ;;  %s718_s13 = sphi %s760_s13, %s988_s13   ;;  %s714_s12 = sphi %s758_s12, %s987_s12  }
   0x7   : > { %p40_p0 = scmp.ne.s32.totalorder %s718_s13, %s714_s12  ;;  %p971_p1 = scmp.eq.s32.totalorder %s779_s16, 0 }
   0x8   : > { %p112_p3 = scmp.eq.s32.totalorder %s474_s17, 1  ;;  %p475_p5 = scmp.ge.s32.totalorder %s726_s15, 1 }
   0x9   : > { %p788_p4 = por %p971_p1, %p40_p0  ;;  %p119_p7 = scmp.lt.s32.totalorder %s726_s15, 3 }
   0xa   : > { %p793_p6 = por %p112_p3, %p40_p0  ;;  %s728_s21 = smov [#allocation5]  }
   0xb   : > { %s974_s18 = scalar_select %p788_p4, 1, 0 }
   0xc   : > { %s975_s19 = scalar_select %p793_p6, 1, 0 }
   0xd   : > { %p798_p8 = pnand %p475_p5, %p119_p7  ;;  %s131_s22 = sshll.u32 %s728_s21, 4  ;;  %s802_s22 = int_to_ptr.vmem [resolvable:$true] %s131_s22 }
   0xe   : > { %s814_s24 = sadd.s32 1, %s726_s15   ;;  %s27_s25 = sadd.s32 1, %s722_s14 }
   0xf   : > { %s976_s20 = scalar_select %p798_p8, 1, 0 }
  0x10   : > { %p527_p9 = pneg %p798_p8  ;;  %s24_s26 = ssub.s32 %s726_s15, %s814_s24 }
  0x11   : > { %s598_s29 = scalar_lea.hbm %s968_s1, 1536 }
  0x12   : > { %p809_p11 = pnand %p527_p9, %p971_p1  ;;  %p599_p12 = scmp.ne.s32.totalorder %s968_s1, %s598_s29 }
  0x13   : > { %p605_p5 = scmp.lt.u32.totalorder %s598_s29, %s968_s1 }
  0x14   : > { %p600_p13 = pneg %p809_p11 }
  0x16   : > { %p601_p0 = pnand %p600_p13, %p599_p12 }
  0x18   : > { %p602_p3 = pneg %p601_p0 }
  0x1a   : > { %p607_p7 = pnand %p605_p5, %p602_p3 }
  0x1c   : > { %610 = shalt.err (!%p607_p7)
}
  0x1d   : > { %s611_s7 = scalar_lea.vmem %s802_s22, 1536  ;;  %p619_p2 = scmp.lt.s32.totalorder %s802_s22, %s802_s22 }
  0x1e   : > { %p612_p9 = scmp.ne.s32.totalorder %s802_s22, %s611_s7  ;;  %p620_p6 = scmp.lt.s32.totalorder %s611_s7, %s611_s7 }
  0x20   : > { %p614_p10 = pnand %p612_p9, %p600_p13  ;;  %p621_p4 = por %p620_p6, %p619_p2 }
  0x22   : > { %p615_p1 = pneg %p614_p10 }
  0x24   : > { %p622_p8 = pnand %p621_p4, %p615_p1 }
  0x26   : > { %625 = shalt.err (!%p622_p8)
}
  0x27   : > { %s729_s8 = smov 64   ;;  %s730_s9 = smov 4  }
  0x28   : > { %530 = dma.hbm_to_vmem [thread:$0]  (!%p809_p11), %s968_s1, 1536, %s802_s22, [#allocation6], %s729_s8, %s729_s8, %s730_s9  }
  0x29   : > { %p25_p2 = scmp.eq.s32.totalorder %s24_s26, 0  ;;  %p34_p1 = scmp.ne.s32.totalorder %s722_s14, %s718_s13 }
  0x2a   : > { %p35_p4 = scmp.eq.s32.totalorder %s726_s15, 0  ;;  %p540_p6 = scmp.lt.s32.totalorder %s726_s15, 2 }
  0x2b   : > { %s845_s17 = scalar_select %p25_p2, %s722_s14, %s27_s25  }
  0x2c   : > { %p36_p8 = por %p35_p4, %p34_p1  ;;  %p978_p10 = scmp.eq.s32.totalorder %s779_s16, 1 }
  0x2d   : > { %s148_s27 = sand.u32 1, %s722_s14   ;;  %s510_s28 = sshll.u32 %s726_s15, 8 }
  0x2e   : > { %p849_p12 = por %p978_p10, %p34_p1  ;;  %s478_s29 = sshll.u32 %s148_s27, 4 }
  0x2f   : > { %s858_s4 = scalar_lea.hbm %s967_s0, %s510_s28  ;;  %s152_s22 = scalar_lea.vmem [#allocation2], %s478_s29 }
  0x30   : > { %s160_s25 = sshll.u32 %s152_s22, 4  ;;  %p860_p11 = pnand %p540_p6, %p36_p8  ;;  %s864_s25 = int_to_ptr.vmem [resolvable:$true] %s160_s25 }
  0x31   : > { %s866_s5 = scalar_lea.sflag [#allocation3], %s148_s27  ;;  %s626_s6 = scalar_lea.hbm %s858_s4, 256 }
  0x32   : > { %p627_p13 = scmp.ne.s32.totalorder %s858_s4, %s626_s6  ;;  %p628_p0 = pneg %p860_p11 }
  0x33   : > { %s631_s9 = scalar_lea.hbm %s967_s0, 512  ;;  %p632_p7 = scmp.lt.u32.totalorder %s858_s4, %s967_s0 }
  0x34   : > { %p629_p3 = pnand %p628_p0, %p627_p13  ;;  %p633_p9 = scmp.lt.u32.totalorder %s631_s9, %s626_s6 }
  0x35   : > { %p635_p1 = scmp.lt.u32.totalorder %s626_s6, %s858_s4 }
  0x36   : > { %p630_p5 = pneg %p629_p3  ;;  %p634_p2 = por %p633_p9, %p632_p7 }
  0x38   : > { %p636_p4 = por %p635_p1, %p634_p2 }
  0x3a   : > { %p637_p6 = pnand %p636_p4, %p630_p5 }
  0x3c   : > { %640 = shalt.err (!%p637_p6)
}
  0x3d   : > { %s641_s27 = scalar_lea.vmem %s864_s25, 256  ;;  %s731_s28 = smov [#allocation2]  }
  0x3e   : > { %p642_p8 = scmp.ne.s32.totalorder %s864_s25, %s641_s27  ;;  %s646_s29 = sshll.u32 %s731_s28, 4  ;;  %s647_s29 = int_to_ptr.vmem [resolvable:$false] %s646_s29 }
  0x3f   : > { %s648_s23 = scalar_lea.vmem %s647_s29, 512  ;;  %p649_p3 = scmp.lt.s32.totalorder %s864_s25, %s647_s29 }
  0x40   : > { %p644_p10 = pnand %p642_p8, %p628_p0  ;;  %p650_p7 = scmp.lt.s32.totalorder %s648_s23, %s641_s27 }
  0x42   : > { %p645_p13 = pneg %p644_p10  ;;  %p651_p9 = por %p650_p7, %p649_p3 }
  0x44   : > { %p652_p2 = pnand %p651_p9, %p645_p13 }
  0x46   : > { %655 = shalt.err (!%p652_p2)
}
  0x47   : > { %s732_s30 = smov 128   ;;  %s733_s22 = smov 8  }
  0x48   : > { %534 = dma.hbm_to_vmem [thread:$0]  (!%p860_p11), %s858_s4, 256, %s864_s25, %s866_s5, %s732_s30, %s732_s30, %s733_s22  }
  0x49   : > { %p981_p0 = scmp.ne.s32.totalorder %s976_s20, 0 }
  0x4a   : > { %s897_s6 = sand.u32 (!%p981_p0), 1, %s718_s13   ;;  %p982_p5 = scmp.ne.s32.totalorder (!%p981_p0), %s974_s18, 0 }
  0x4b   : > { %172 = sbr.rel (%p981_p0) target bundleno = 368 (0x170), region = 32  ;;  %s483_s7 = sshll.u32 (!%p981_p0), %s897_s6, 4 }
  0x4c   : > { %s175_s8 = scalar_lea.sflag (!%p981_p0), [#allocation3], %s897_s6  ;;  %s901_s9 = scalar_lea.vmem (!%p981_p0), [#allocation2], %s483_s7 }
  0x52   : > { %701 = dma.done.wait (%p982_p5), %s175_s8, 256  }
  0x53   : > { %703 = vsyncadd (%p982_p5), %s175_s8, 4294967040  ;;  %p983_p11 = scmp.eq.s32.totalorder %s779_s16, 0 }
  0x55   : > { %705 = dma.done.wait (%p983_p11), [#allocation6], 1536   ;;  %p984_p1 = pmov %p983_p11 }
  0x56   : > { %v734_v0 = vmov 0   ;;  %v583_v1 = vld [vmem:[#allocation5] sm:$0xff]   ;;  %v584_v2 = vld [vmem:[#allocation5 + $0x8] sm:$0xff]   ;;  %v585_v3 = vld [vmem:[#allocation5 + $0x10] sm:$0xff]   ;;  %vm322_vm0 = vcmask 523264   ;;  %s485_s18 = sshll.u32 %s897_s6, 3 }
  0x57   : > { %707 = vsyncadd (%p984_p1), [#allocation6], 4294965760  ;;  %326 = vmatprep.subr.bf16.mxu0 %v734_v0  ;;  %v586_v4 = vld [vmem:[#allocation5 + $0x18] sm:$0xff]   ;;  %v587_v6 = vld [vmem:[#allocation5 + $0x20] sm:$0xff]   ;;  %s204_s25 = scalar_lea.vmem [#allocation7], %s485_s18  ;;  %s513_s5 = sshll.u32 %s779_s16, 7 }
  0x58   : > { %327 = vmatpush1.bf16.msra.mxu0 %v583_v1  ;;  %v597_v5 = vld [vmem:[%s901_s9 + $0x4] ss:$8 sps:$4 sm:$0xff]   ;;  %v595_v14 = vld [vmem:[%s901_s9] ss:$8 sps:$4 sm:$0xff]   ;;  %s391_s26 = sshll.u32 %s204_s25, 4  ;;  %s923_s27 = scalar_lea.hbm %s970_s3, %s513_s5  ;;  %s918_s26 = int_to_ptr.vmem [resolvable:$true] %s391_s26 }
  0x59   : > { %328 = vmatprep.subr.bf16.mxu0 %v734_v0  ;;  %501 = vmatprep.mubr.msk.bf16.mxu0 %vm322_vm0, %v597_v5  ;;  %v588_v7 = vld [vmem:[#allocation5 + $0x28] sm:$0xff]   ;;  %v589_v8 = vld [vmem:[#allocation5 + $0x30] sm:$0xff]   ;;  %v590_v9 = vld [vmem:[#allocation5 + $0x38] sm:$0xff]   ;;  %s378_s28 = scalar_lea.sflag [#allocation4], %s897_s6  ;;  %s656_s29 = scalar_lea.vmem %s918_s26, 128 }
  0x5a   : > { %v591_v10 = vld [vmem:[#allocation5 + $0x40] sm:$0xff]   ;;  %v592_v11 = vld [vmem:[#allocation5 + $0x48] sm:$0xff]   ;;  %v593_v12 = vld [vmem:[#allocation5 + $0x50] sm:$0xff]   ;;  %p657_p4 = scmp.ne.s32.totalorder %s918_s26, %s656_s29  ;;  %s735_s16 = smov [#allocation7]  }
  0x5b   : > { %v594_v13 = vld [vmem:[#allocation5 + $0x58] sm:$0xff]   ;;  %v486_v15 = vld [vmem:[%s969_s2] ss:$0 sm:$0xff]  ;;  %s660_s23 = sshll.u32 %s735_s16, 4  ;;  %s661_s23 = int_to_ptr.vmem [resolvable:$false] %s660_s23 }
  0x5c   : > { %329 = vmatpush1.bf16.msra.mxu0 %v584_v2  ;;  %p658_p6 = pnand %p657_p4, %p849_p12  ;;  %s662_s30 = scalar_lea.vmem %s661_s23, 256 }
  0x5d   : > { %330 = vmatprep.subr.bf16.mxu0 %v734_v0  ;;  %p663_p10 = scmp.lt.s32.totalorder %s918_s26, %s661_s23  ;;  %p664_p13 = scmp.lt.s32.totalorder %s662_s30, %s656_s29 }
  0x5e   : > { %p659_p8 = pneg %p658_p6 }
  0x5f   : > { %p665_p3 = por %p664_p13, %p663_p10 }
  0x60   : > { %331 = vmatpush1.bf16.msra.mxu0 %v585_v3 }
  0x61   : > { %332 = vmatprep.subr.bf16.mxu0 %v734_v0  ;;  %p666_p7 = pnand %p665_p3, %p659_p8 }
  0x64   : > { %333 = vmatpush1.bf16.msra.mxu0 %v586_v4 }
  0x65   : > { %334 = vmatprep.subr.bf16.mxu0 %v734_v0 }
  0x68   : > { %335 = vmatpush1.bf16.msra.mxu0 %v587_v6 }
  0x69   : > { %336 = vmatprep.subr.bf16.mxu0 %v734_v0 }
  0x6c   : > { %337 = vmatpush1.bf16.msra.mxu0 %v588_v7 }
  0x6d   : > { %338 = vmatprep.subr.bf16.mxu0 %v734_v0 }
  0x70   : > { %339 = vmatpush1.bf16.msra.mxu0 %v589_v8 }
  0x71   : > { %340 = vmatprep.subr.bf16.mxu0 %v734_v0 }
  0x74   : > { %341 = vmatpush1.bf16.msra.mxu0 %v590_v9 }
  0x75   : > { %342 = vmatprep.subr.bf16.mxu0 %v734_v0 }
  0x78   : > { %343 = vmatpush1.bf16.msra.mxu0 %v591_v10 }
  0x79   : > { %344 = vmatprep.subr.bf16.mxu0 %v734_v0 }
  0x7c   : > { %345 = vmatpush1.bf16.msra.mxu0 %v592_v11 }
  0x7d   : > { %346 = vmatprep.subr.bf16.mxu0 %v734_v0 }
  0x80   : > { %347 = vmatpush1.bf16.msra.mxu0 %v593_v12 }
  0x81   : > { %348 = vmatprep.subr.bf16.mxu0 %v734_v0 }
  0x84   : > { %349 = vmatpush1.bf16.msra.mxu0 %v594_v13 }
  0x87   : > { %359 = vmatmul.mubr.bf16.vlgmr.msra.gmra.mrb[0].mxu0 %v595_v14 }
 0x15a   : > { %v360_v16 = vpop.f32.mrb[0].mxu0 }
 0x15b   : > { %v362_v17 = vpop.f32.mrb[1].mxu0  ;;  %v361_v19 = vadd.f32 %v486_v15, %v360_v16 }
 0x15c   : > { %v363_v18 = vpop.f32.mrb[2].mxu0 }
 0x15d   : > { %v364_v20 = vadd.f32 %v486_v15, %v363_v18  ;;  %v365_v21 = vpop.f32.mrb[3].mxu0 }
 0x15f   : > { %v517_v22 = vpack.c.bf16 %v364_v20, %v361_v19 }
 0x161   : > { %518 = vst [vmem:[%s204_s25] sm:$0xff] %v517_v22  }
 0x162   : > { %669 = shalt.err (!%p666_p7)
}
 0x163   : > { %s670_s22 = scalar_lea.hbm %s923_s27, 128  ;;  %s674_s9 = scalar_lea.hbm %s970_s3, 256 }
 0x164   : > { %p671_p9 = scmp.ne.s32.totalorder %s923_s27, %s670_s22  ;;  %p675_p5 = scmp.lt.u32.totalorder %s923_s27, %s970_s3 }
 0x165   : > { %p676_p11 = scmp.lt.u32.totalorder %s674_s9, %s670_s22  ;;  %p678_p4 = scmp.lt.u32.totalorder %s670_s22, %s923_s27 }
 0x166   : > { %p672_p2 = pnand %p671_p9, %p849_p12 }
 0x167   : > { %p677_p1 = por %p676_p11, %p675_p5 }
 0x168   : > { %p673_p0 = pneg %p672_p2 }
 0x169   : > { %p679_p6 = por %p678_p4, %p677_p1 }
 0x16b   : > { %p680_p8 = pnand %p679_p6, %p673_p0 }
 0x16d   : > { %683 = shalt.err (!%p680_p8)
}
 0x16e   : > { %s736_s4 = smov 64   ;;  %s737_s25 = smov 4  }
 0x16f   : > { %525 = dma.vmem_to_hbm [thread:$0]  (%p849_p12), %s918_s26, 128, %s923_s27, %s378_s28, %s736_s4, %s736_s4, %s737_s25  }
 0x170 PF: > { %s406_s5 = sand.u32 1, %s714_s12   ;;  %p985_p10 = scmp.ne.s32.totalorder %s975_s19, 0 }
 0x171   : > { %p986_p13 = scmp.ge.s32.totalorder %s726_s15, 2  ;;  %s407_s10 = scalar_lea.sflag [#allocation4], %s406_s5 }
 0x173   : > { %p536_p3 = pnand %p986_p13, %p985_p10 }
 0x175   : > { %709 = dma.done.wait (!%p536_p3), %s407_s10, 128  }
 0x176   : > { %711 = vsyncadd (!%p536_p3), %s407_s10, 4294967168  ;;  %p17_p7 = scmp.ge.s32.totalorder %s814_s24, 4   ;;  %s987_s12 = smov %s718_s13 }
 0x177   : > { %s988_s13 = smov %s722_s14  ;;  %s989_s14 = smov %s845_s17 }
 0x178   : > { %s990_s15 = smov %s814_s24  ;;  %19 = sbr.rel (!%p17_p7) target bundleno = 6 (0x6), region = 81 }
 0x17f   :  { %412 = vsyncpa [#allocation3], 1 }
 0x180   :  { %414 = vsyncpa [#allocation3 + $0x1], 1 }
 0x181   :  { %415 = vsyncpa [#allocation6], 1 }
 0x182   :  { %416 = vsyncpa [#allocation4], 1 }
 0x183   :  { %418 = vsyncpa [#allocation4 + $0x1], 1 }

</bundles_post_ra>
